<compile_context>
chip_gen: v7x
topology: tpu7x:2x2x1
jax: 0.10.0
libtpu: 0.0.40
codegen_flags: <defaults>
</compile_context>

<pallas_src>
import functools

import jax
import jax.numpy as jnp
from jax.experimental import pallas as pl
from jax.experimental.pallas import tpu as pltpu


def _critic_kernel(sa_ref, w1t_ref, b1_ref, w2t_ref, b2_ref, w3_ref, b3_ref,
                   out_ref):
    """Feature-major (batch-on-lanes) TD3 critic MLP.

    sa_ref : (K, TILE_B)   packed [state; action] columns
    w1t_ref: (H0, K)       transposed layer-1 weight
    b1_ref : (H0, 1)
    w2t_ref: (H1, H0)      transposed layer-2 weight
    b2_ref : (H1, 1)
    w3_ref : (H1, 1)       output weight as a column (VPU path)
    b3_ref : (1, 1)        scalar output bias (SMEM)
    out_ref: (1, TILE_B)   lane-dense q row
    """
    # Layer 1: (H0, K) @ (K, TILE_B) on the MXU; bias broadcast over lanes.
    h1 = jnp.dot(w1t_ref[...], sa_ref[...], preferred_element_type=jnp.float32)
    h1 = jnp.maximum(h1 + b1_ref[...], 0.0)

    # Layer 2: (H1, H0) @ (H0, TILE_B).
    h2 = jnp.dot(w2t_ref[...], h1, preferred_element_type=jnp.float32)
    h2 = jnp.maximum(h2 + b2_ref[...], 0.0)

    # Output layer (out_features == 1): VPU multiply + sublane reduce; result is
    # already lane-dense (1, TILE_B), so the store is an unmasked vst.
    q = jnp.sum(h2 * w3_ref[...], axis=0, keepdims=True) + b3_ref[0, 0]
    out_ref[...] = q.astype(out_ref.dtype)


def pack_critic_params(params):
    """One-time parameter massaging, hoisted out of the forward pass."""
    w1, b1, w2, b2, w3, b3 = params
    h0 = w1.shape[1]
    h1 = w2.shape[1]
    w1t = jnp.transpose(w1)                 # (H0, K)
    b1c = jnp.reshape(b1, (h0, 1))          # (H0, 1) column (broadcast over lanes)
    w2t = jnp.transpose(w2)                 # (H1, H0)
    b2c = jnp.reshape(b2, (h1, 1))          # (H1, 1)
    w3c = jnp.reshape(w3, (h1, 1))          # (H1, 1) column for the VPU reduce
    b3s = jnp.reshape(b3, (1, 1))           # scalar, lives in SMEM
    return (w1t, b1c, w2t, b2c, w3c, b3s)


@functools.partial(jax.jit, static_argnames=("tile_b",))
def critic_forward(state, action, packed_params, *, tile_b=1024):
    """Pallas forward pass of the Critic. Returns q-values of shape (B,)."""
    w1t, b1c, w2t, b2c, w3c, b3s = packed_params
    B = state.shape[0]
    h0, k = w1t.shape
    h1 = w2t.shape[0]

    # Pack [state, action] feature-major: one dense K=16 stream, batch on lanes.
    # TODO(synk): in a real training loop this packed/transposed `sa` should come
    # pre-packed from the replay buffer / upstream producer instead of here.
    sa_t = jnp.transpose(jnp.concatenate([state, action], axis=-1))  # (K, B)

    # Batch tiling: lane axis in multiples of 128, no host padding (cdiv grid,
    # last partial block's writes are clipped).  Cap the tile so there are
    # always >= 2 grid steps when B > 128 (keeps both v7x TensorCores busy).
    tile_b = max(128, ((tile_b + 127) // 128) * 128)
    if B <= 128:
        tb = B                                # single full-array block
    else:
        half_up = ((-(-B // 2) + 127) // 128) * 128
        tb = min(tile_b, half_up)
    grid = (pl.cdiv(B, tb),)

    q = pl.pallas_call(
        _critic_kernel,
        out_shape=jax.ShapeDtypeStruct((1, B), jnp.float32),
        grid=grid,
        in_specs=[
            # Batch-streamed packed activations, lane-dense (K, TILE_B) blocks.
            pl.BlockSpec((k, tb), lambda i: (0, i)),
            # Weights / biases: constant index_map -> resident across the grid.
            pl.BlockSpec((h0, k), lambda i: (0, 0)),
            pl.BlockSpec((h0, 1), lambda i: (0, 0)),
            pl.BlockSpec((h1, h0), lambda i: (0, 0)),
            pl.BlockSpec((h1, 1), lambda i: (0, 0)),
            pl.BlockSpec((h1, 1), lambda i: (0, 0)),
            # Scalar output bias lives in SMEM.
            pl.BlockSpec(memory_space=pltpu.MemorySpace.SMEM),
        ],
        # Lane-dense (1, TILE_B) output row (batch on lanes).
        out_specs=pl.BlockSpec((1, tb), lambda i: (0, i)),
        compiler_params=pltpu.CompilerParams(
            dimension_semantics=("parallel",)),
    )(sa_t, w1t, b1c, w2t, b2c, w3c, b3s)

    return q[0]


def init_critic_params(key, state_dim, action_dim, hidden_sizes=(64, 64)):
    """Deterministic synthetic init (matches the shapes of nn.Linear layers)."""
    in_dim = state_dim + action_dim
    h0, h1 = hidden_sizes
    k1, k2, k3, k4, k5, k6 = jax.random.split(key, 6)

    def lin_init(kw, kb, fan_in, fan_out):
        bound = 1.0 / jnp.sqrt(jnp.asarray(fan_in, jnp.float32))
        w = jax.random.uniform(kw, (fan_in, fan_out), jnp.float32, -bound, bound)
        b = jax.random.uniform(kb, (1, fan_out), jnp.float32, -bound, bound)
        return w, b

    w1, b1 = lin_init(k1, k2, in_dim, h0)
    w2, b2 = lin_init(k3, k4, h0, h1)
    w3, b3 = lin_init(k5, k6, h1, 1)
    return (w1, b1, w2, b2, w3, b3)


def critic_reference(state, action, params):
    """Pure-JAX reference for correctness checking."""
    w1, b1, w2, b2, w3, b3 = params
    sa = jnp.concatenate([state, action], axis=-1)
    h = jnp.maximum(sa @ w1 + b1, 0.0)
    h = jnp.maximum(h @ w2 + b2, 0.0)
    return jnp.squeeze(h @ w3 + b3, axis=-1)


if __name__ == "__main__":
    key = jax.random.PRNGKey(0)
    k_params, k_state, k_action, k_state2, k_action2 = jax.random.split(key, 5)

    state_dim = 12
    action_dim = 4
    hidden_sizes = (64, 64)
    params = init_critic_params(k_params, state_dim, action_dim, hidden_sizes)
    packed_params = pack_critic_params(params)

    # Small-batch path (single full-batch block).
    batch = 8
    state = jax.random.normal(k_state, (batch, state_dim), jnp.float32)
    action = jax.random.normal(k_action, (batch, action_dim), jnp.float32)
    q = jax.block_until_ready(critic_forward(state, action, packed_params))
    q_ref = critic_reference(state, action, params)
    assert q.shape == (batch,), q.shape
    assert jnp.allclose(q, q_ref, atol=1e-4, rtol=1e-4), (q, q_ref)

    # Gridded path (cdiv grid, partial last block, parallel batch axis).
    batch2 = 300
    state2 = jax.random.normal(k_state2, (batch2, state_dim), jnp.float32)
    action2 = jax.random.normal(k_action2, (batch2, action_dim), jnp.float32)
    q2 = jax.block_until_ready(
        critic_forward(state2, action2, packed_params, tile_b=128))
    q2_ref = critic_reference(state2, action2, params)
    assert q2.shape == (batch2,), q2.shape
    assert jnp.allclose(q2, q2_ref, atol=1e-4, rtol=1e-4), (q2, q2_ref)

    print("KERNEL_OK")
</pallas_src>

<mosaic_0001>
module attributes {stable_mosaic.version = 11 : i64} {
  func.func @_critic_kernel(%arg0: i32, %arg1: memref<16x8xf32, #tpu.memory_space<vmem>>, %arg2: memref<64x16xf32, #tpu.memory_space<vmem>>, %arg3: memref<64x1xf32, #tpu.memory_space<vmem>>, %arg4: memref<64x64xf32, #tpu.memory_space<vmem>>, %arg5: memref<64x1xf32, #tpu.memory_space<vmem>>, %arg6: memref<64x1xf32, #tpu.memory_space<vmem>>, %arg7: memref<1x1xf32, #tpu.memory_space<smem>>, %arg8: memref<1x8xf32, #tpu.memory_space<vmem>>) attributes {dimension_semantics = [#tpu.dimension_semantics<parallel>], iteration_bounds = array<i64: 1>, scalar_prefetch = 0 : i64, scratch_operands = 0 : i64, tpu.core_type = #tpu.core_type<tc>, window_params = [{transform_indices = @transform_0, window_bounds = array<i64: 16, 8>}, {pipeline_mode = #tpu.pipeline_mode<synchronous>, transform_indices = @transform_1, window_bounds = array<i64: 64, 16>}, {pipeline_mode = #tpu.pipeline_mode<synchronous>, transform_indices = @transform_2, window_bounds = array<i64: 64, 1>}, {pipeline_mode = #tpu.pipeline_mode<synchronous>, transform_indices = @transform_3, window_bounds = array<i64: 64, 64>}, {pipeline_mode = #tpu.pipeline_mode<synchronous>, transform_indices = @transform_4, window_bounds = array<i64: 64, 1>}, {pipeline_mode = #tpu.pipeline_mode<synchronous>, transform_indices = @transform_5, window_bounds = array<i64: 64, 1>}, {transform_indices = @transform_6, window_bounds = array<i64: 1, 1>}, {transform_indices = @transform_7, window_bounds = array<i64: 1, 8>}]} {
    %c0 = arith.constant 0 : index
    %c0_0 = arith.constant 0 : index
    %0 = vector.load %arg2[%c0, %c0_0] : memref<64x16xf32, #tpu.memory_space<vmem>>, vector<64x16xf32>
    %c0_1 = arith.constant 0 : index
    %c0_2 = arith.constant 0 : index
    %1 = vector.load %arg1[%c0_1, %c0_2] : memref<16x8xf32, #tpu.memory_space<vmem>>, vector<16x8xf32>
    %cst = arith.constant dense<0.000000e+00> : vector<64x8xf32>
    %2 = tpu.matmul %0, %1, %cst {dimension_numbers = #tpu.dot_dimension_numbers<[1], [0], [0], [1], [0, 0, 1, 1], [], []>} : vector<64x16xf32>, vector<16x8xf32>, vector<64x8xf32> -> vector<64x8xf32>
    %c0_3 = arith.constant 0 : index
    %c0_4 = arith.constant 0 : index
    %3 = vector.load %arg3[%c0_3, %c0_4] : memref<64x1xf32, #tpu.memory_space<vmem>>, vector<64x1xf32>
    %4 = vector.broadcast %3 : vector<64x1xf32> to vector<64x8xf32>
    %5 = arith.addf %2, %4 : vector<64x8xf32>
    %cst_5 = arith.constant 0.000000e+00 : f32
    %6 = vector.broadcast %cst_5 : f32 to vector<64x8xf32>
    %7 = arith.maximumf %5, %6 : vector<64x8xf32>
    %c0_6 = arith.constant 0 : index
    %c0_7 = arith.constant 0 : index
    %8 = vector.load %arg4[%c0_6, %c0_7] : memref<64x64xf32, #tpu.memory_space<vmem>>, vector<64x64xf32>
    %cst_8 = arith.constant dense<0.000000e+00> : vector<64x8xf32>
    %9 = tpu.matmul %8, %7, %cst_8 {dimension_numbers = #tpu.dot_dimension_numbers<[1], [0], [0], [1], [0, 0, 1, 1], [], []>} : vector<64x64xf32>, vector<64x8xf32>, vector<64x8xf32> -> vector<64x8xf32>
    %c0_9 = arith.constant 0 : index
    %c0_10 = arith.constant 0 : index
    %10 = vector.load %arg5[%c0_9, %c0_10] : memref<64x1xf32, #tpu.memory_space<vmem>>, vector<64x1xf32>
    %11 = vector.broadcast %10 : vector<64x1xf32> to vector<64x8xf32>
    %12 = arith.addf %9, %11 : vector<64x8xf32>
    %cst_11 = arith.constant 0.000000e+00 : f32
    %13 = vector.broadcast %cst_11 : f32 to vector<64x8xf32>
    %14 = arith.maximumf %12, %13 : vector<64x8xf32>
    %c0_12 = arith.constant 0 : index
    %c0_13 = arith.constant 0 : index
    %15 = vector.load %arg6[%c0_12, %c0_13] : memref<64x1xf32, #tpu.memory_space<vmem>>, vector<64x1xf32>
    %16 = vector.broadcast %15 : vector<64x1xf32> to vector<64x8xf32>
    %17 = arith.mulf %14, %16 : vector<64x8xf32>
    %cst_14 = arith.constant dense<0.000000e+00> : vector<8xf32>
    %18 = vector.multi_reduction <add>, %17, %cst_14 [0] : vector<64x8xf32> to vector<8xf32>
    %19 = vector.shape_cast %18 : vector<8xf32> to vector<1x8xf32>
    %c0_15 = arith.constant 0 : index
    %c0_16 = arith.constant 0 : index
    %20 = memref.load %arg7[%c0_15, %c0_16] : memref<1x1xf32, #tpu.memory_space<smem>>
    %21 = vector.broadcast %20 : f32 to vector<1x8xf32>
    %22 = arith.addf %19, %21 : vector<1x8xf32>
    %c0_17 = arith.constant 0 : index
    %c0_18 = arith.constant 0 : index
    %23 = vector.load %arg8[%c0_17, %c0_18] : memref<1x8xf32, #tpu.memory_space<vmem>>, vector<1x8xf32>
    tpu.vector_store %arg8[%c0_17, %c0_18], %22 {strides = array<i32>} : memref<1x8xf32, #tpu.memory_space<vmem>>, vector<1x8xf32>,
    return
  }
  func.func @transform_0(%arg0: i32) -> (i32, i32) {
    %c0_i32 = arith.constant 0 : i32
    %c0_i32_0 = arith.constant 0 : i32
    return %c0_i32, %arg0 : i32, i32
  }
  func.func @transform_1(%arg0: i32) -> (i32, i32) {
    %c0_i32 = arith.constant 0 : i32
    %c0_i32_0 = arith.constant 0 : i32
    %c0_i32_1 = arith.constant 0 : i32
    return %c0_i32, %c0_i32_0 : i32, i32
  }
  func.func @transform_2(%arg0: i32) -> (i32, i32) {
    %c0_i32 = arith.constant 0 : i32
    %c0_i32_0 = arith.constant 0 : i32
    %c0_i32_1 = arith.constant 0 : i32
    return %c0_i32, %c0_i32_0 : i32, i32
  }
  func.func @transform_3(%arg0: i32) -> (i32, i32) {
    %c0_i32 = arith.constant 0 : i32
    %c0_i32_0 = arith.constant 0 : i32
    %c0_i32_1 = arith.constant 0 : i32
    return %c0_i32, %c0_i32_0 : i32, i32
  }
  func.func @transform_4(%arg0: i32) -> (i32, i32) {
    %c0_i32 = arith.constant 0 : i32
    %c0_i32_0 = arith.constant 0 : i32
    %c0_i32_1 = arith.constant 0 : i32
    return %c0_i32, %c0_i32_0 : i32, i32
  }
  func.func @transform_5(%arg0: i32) -> (i32, i32) {
    %c0_i32 = arith.constant 0 : i32
    %c0_i32_0 = arith.constant 0 : i32
    %c0_i32_1 = arith.constant 0 : i32
    return %c0_i32, %c0_i32_0 : i32, i32
  }
  func.func @transform_6(%arg0: i32) -> (i32, i32) {
    %c0_i32 = arith.constant 0 : i32
    %c0_i32_0 = arith.constant 0 : i32
    %c0_i32_1 = arith.constant 0 : i32
    return %c0_i32, %c0_i32_0 : i32, i32
  }
  func.func @transform_7(%arg0: i32) -> (i32, i32) {
    %c0_i32 = arith.constant 0 : i32
    %c0_i32_0 = arith.constant 0 : i32
    return %c0_i32, %arg0 : i32, i32
  }
}

</mosaic_0001>

<bundles_post_ra>
// kernel: critic_forward.1
= control target key start
LH: loop header
LB: loop body
LE: loop exit
PB: predicated region body
PF: predicated region fallthrough
CT: control target
= control target key end

     0   :  { %vm86_vm0 = vcmask 130048   ;;  %v657_v4 = vmov 0   ;;  %s864_s0 = inlined_call_operand.vmem [shape: f32[16,8], index: 0, kind: input, shape index: {}]   ;;  %s865_s1 = inlined_call_operand.vmem [shape: f32[64,16], index: 1, kind: input, shape index: {}]   ;;  %s866_s2 = inlined_call_operand.vmem [shape: f32[64,1], index: 2, kind: input, shape index: {}]   ;;  %s867_s3 = inlined_call_operand.vmem [shape: f32[64,64], index: 3, kind: input, shape index: {}]   ;;  %s868_s4 = inlined_call_operand.vmem [shape: f32[64,1], index: 4, kind: input, shape index: {}]   ;;  %s869_s5 = inlined_call_operand.vmem [shape: f32[64,1], index: 5, kind: input, shape index: {}]   ;;  %s870_s6 = inlined_call_operand.<no memory space> [shape: f32[1,1], index: 6, kind: input, shape index: {}]   ;;  %s871_s7 = inlined_call_operand.hbm [shape: f32[1,8], index: 7, kind: output, shape index: {}]  }
   0x1   :  { %v36_v0 = vld [vmem:[%s864_s0] sm:$0xff]  ;;  %v37_v1 = vld [vmem:[%s864_s0 + $0x8] sm:$0xff]  ;;  %631 = vset.pattern.permute.xlu0 %v657_v4  ;;  %632 = vset.pattern.permute.xlu1 %v657_v4  ;;  %v40_v6 = vld [vmem:[%s866_s2 + $0x10] sm:$0xff] }
   0x2   :  { %v28_v2 = vld [vmem:[%s865_s1] sm:$0xff]  ;;  %v601_v3 = vpack.c.bf16 %v37_v1, %v36_v0  ;;  %v29_v7 = vld [vmem:[%s865_s1 + $0x8] sm:$0xff]  ;;  %v30_v8 = vld [vmem:[%s865_s1 + $0x10] sm:$0xff]  ;;  %58 = vperm.xlu1 %632, %v40_v6  }
   0x3   :  { %561 = vmatprep.mubr.msk.f32.mxu0 %vm86_vm0, %v28_v2  ;;  %v38_v5 = vld [vmem:[%s866_s2] sm:$0xff]  ;;  %v39_v9 = vld [vmem:[%s866_s2 + $0x8] sm:$0xff]  ;;  %v41_v10 = vld [vmem:[%s866_s2 + $0x18] sm:$0xff] }
   0x4   :  { %602 = vmatprep.subr.bf16.mxu0 %v601_v3  ;;  %48 = vperm.xlu0 %631, %v38_v5   ;;  %v31_v11 = vld [vmem:[%s865_s1 + $0x18] sm:$0xff]  ;;  %v32_v12 = vld [vmem:[%s865_s1 + $0x20] sm:$0xff]  ;;  %v43_v14 = vld [vmem:[%s866_s2 + $0x28] sm:$0xff] }
   0x5   :  { %604 = vmatpush3.bf16.msra.mxu0 %v601_v3  ;;  %v42_v13 = vld [vmem:[%s866_s2 + $0x20] sm:$0xff] }
   0x6   :  { %63 = vperm.xlu1 %632, %v41_v10  }
   0x8   :  { %562 = vmatmul.mubr.msk.f32.vlgmr.msra.gmra.mrb[0].mxu0 %vm86_vm0, %v29_v7  ;;  %53 = vperm.xlu0 %631, %v39_v9  }
   0x9   :  { %564 = vmatprep.mubr.msk.f32.mxu0 %vm86_vm0, %v30_v8 }
   0xc   :  { %565 = vmatmul.mubr.msk.f32.gmra.mrb[2].mxu0 %vm86_vm0, %v31_v11 }
   0xd   :  { %13 = vsyncpa [#allocation4], 0  ;;  %567 = vmatprep.mubr.msk.f32.mxu0 %vm86_vm0, %v32_v12  ;;  %v33_v15 = vld [vmem:[%s865_s1 + $0x28] sm:$0xff]  ;;  %68 = vperm.xlu0 %631, %v42_v13   ;;  %v34_v16 = vld [vmem:[%s865_s1 + $0x30] sm:$0xff]  ;;  %vm280_vm1 = vcmask 523264   ;;  %vm474_vm2 = vcmask 64512  }
   0xe   :  { %73 = vperm.xlu1 %632, %v43_v14   ;;  %v44_v17 = vld [vmem:[%s866_s2 + $0x30] sm:$0xff]  ;;  %v45_v18 = vld [vmem:[%s866_s2 + $0x38] sm:$0xff]  ;;  %v232_v20 = vld [vmem:[%s868_s4] sm:$0xff]  ;;  %s658_s8 = smov [#allocation3]   ;;  %vm499_vm3 = vcmask 57344  }
   0xf   :  { %v35_v19 = vld [vmem:[%s865_s1 + $0x38] sm:$0xff]  ;;  %v233_v21 = vld [vmem:[%s868_s4 + $0x8] sm:$0xff]  ;;  %v234_v22 = vld [vmem:[%s868_s4 + $0x10] sm:$0xff]  ;;  %s507_s9 = sshll.u32 %s658_s8, 4  ;;  %s508_s9 = int_to_ptr.vmem [resolvable:$true] %s507_s9 }
  0x10   :  { %568 = vmatmul.mubr.msk.f32.gmra.mrb[4].mxu0 %vm86_vm0, %v33_v15  ;;  %v235_v23 = vld [vmem:[%s868_s4 + $0x18] sm:$0xff]  ;;  %v418_v24 = vld [vmem:[%s869_s5] sm:$0xff]  ;;  %v419_v25 = vld [vmem:[%s869_s5 + $0x8] sm:$0xff]  ;;  %s633_s10 = scalar_lea.vmem %s508_s9, 16  ;;  %s637_s0 = scalar_lea.vmem %s508_s9, 32 }
  0x11   :  { %570 = vmatprep.mubr.msk.f32.mxu0 %vm86_vm0, %v34_v16  ;;  %78 = vperm.xlu0 %631, %v44_v17   ;;  %v236_v26 = vld [vmem:[%s868_s4 + $0x20] sm:$0xff]  ;;  %v420_v27 = vld [vmem:[%s869_s5 + $0x10] sm:$0xff]  ;;  %v237_v28 = vld [vmem:[%s868_s4 + $0x28] sm:$0xff]  ;;  %p634_p0 = scmp.ne.s32.totalorder %s508_s9, %s633_s10  ;;  %p638_p1 = scmp.lt.s32.totalorder %s508_s9, %s508_s9 }
  0x12   :  { %83 = vperm.xlu1 %632, %v45_v18   ;;  %v421_v29 = vld [vmem:[%s869_s5 + $0x18] sm:$0xff]  ;;  %v238_v30 = vld [vmem:[%s868_s4 + $0x30] sm:$0xff]  ;;  %v422_v31 = vld [vmem:[%s869_s5 + $0x20] sm:$0xff]  ;;  %p639_p2 = scmp.lt.s32.totalorder %s637_s0, %s633_s10 }
  0x13   :  { %v239_v32 = vld [vmem:[%s868_s4 + $0x38] sm:$0xff]  ;;  %v423_v33 = vld [vmem:[%s869_s5 + $0x28] sm:$0xff]  ;;  %v424_v34 = vld [vmem:[%s869_s5 + $0x30] sm:$0xff] }
  0x14   :  { %571 = vmatmul.mubr.msk.f32.gmra.mrb[6].mxu0 %vm86_vm0, %v35_v19  ;;  %v425_v35 = vld [vmem:[%s869_s5 + $0x38] sm:$0xff]  ;;  %v224_v36 = vld [vmem:[%s867_s3] sm:$0xff]  ;;  %v226_v37 = vld [vmem:[%s867_s3 + $0x10] sm:$0xff]  ;;  %p640_p3 = por %p639_p2, %p638_p1 }
  0x15   :  { %242 = vperm.xlu0 %631, %v232_v20   ;;  %589 = vmatprep.mubr.msk.f32.mxu0 %vm280_vm1, %v224_v36  ;;  %v225_v10 = vld [vmem:[%s867_s3 + $0x8] sm:$0xff]  ;;  %v227_v11 = vld [vmem:[%s867_s3 + $0x18] sm:$0xff]  ;;  %v228_v12 = vld [vmem:[%s867_s3 + $0x20] sm:$0xff] }
  0x16   :  { %247 = vperm.xlu1 %632, %v233_v21   ;;  %592 = vmatprep.mubr.msk.f32.mxu1 %vm280_vm1, %v226_v37  ;;  %v229_v13 = vld [vmem:[%s867_s3 + $0x28] sm:$0xff]  ;;  %v230_v14 = vld [vmem:[%s867_s3 + $0x30] sm:$0xff]  ;;  %v231_v15 = vld [vmem:[%s867_s3 + $0x38] sm:$0xff]  ;;  %p641_p4 = pnand %p640_p3, %p634_p0 }
  0x19   :  { %252 = vperm.xlu0 %631, %v234_v22  }
  0x1a   :  { %257 = vperm.xlu1 %632, %v235_v23  }
  0x1d   :  { %428 = vperm.xlu0 %631, %v418_v24  }
  0x1e   :  { %433 = vperm.xlu1 %632, %v419_v25  }
  0x21   :  { %262 = vperm.xlu0 %631, %v236_v26  }
  0x22   :  { %438 = vperm.xlu1 %632, %v420_v27  }
  0x25   :  { %267 = vperm.xlu0 %631, %v237_v28  }
  0x26   :  { %443 = vperm.xlu1 %632, %v421_v29  }
  0x29   :  { %272 = vperm.xlu0 %631, %v238_v30  }
  0x2a   :  { %448 = vperm.xlu1 %632, %v422_v31  }
  0x2d   :  { %277 = vperm.xlu0 %631, %v239_v32  }
  0x2e   :  { %453 = vperm.xlu1 %632, %v423_v33  }
  0x31   :  { %458 = vperm.xlu0 %631, %v424_v34  }
  0x32   :  { %463 = vperm.xlu1 %632, %v425_v35  }
  0x81   :  { %v59_v39 = vpop.permute.xlu1 %58 }
  0x83   :  { %v49_v38 = vpop.permute.xlu0 %48 }
  0x85   :  { %v64_v41 = vpop.permute.xlu1 %63 }
  0x87   :  { %v54_v40 = vpop.permute.xlu0 %53 }
  0x8c   :  { %v69_v54 = vpop.permute.xlu0 %68 }
  0x8d   :  { %v74_v51 = vpop.permute.xlu1 %73 }
  0x90   :  { %v79_v2 = vpop.permute.xlu0 %78 }
  0x91   :  { %v84_v63 = vpop.permute.xlu1 %83 }
  0x94   :  { %v243_v16 = vpop.permute.xlu0 %242 }
  0x95   :  { %v248_v17 = vpop.permute.xlu1 %247 }
  0x98   :  { %v253_v18 = vpop.permute.xlu0 %252 }
  0x99   :  { %v258_v19 = vpop.permute.xlu1 %257 }
  0x9c   :  { %v429_v20 = vpop.permute.xlu0 %428 }
  0x9d   :  { %v434_v21 = vpop.permute.xlu1 %433 }
  0xa0   :  { %v263_v22 = vpop.permute.xlu0 %262 }
  0xa1   :  { %v439_v23 = vpop.permute.xlu1 %438 }
  0xa4   :  { %v268_v24 = vpop.permute.xlu0 %267 }
  0xa5   :  { %v444_v25 = vpop.permute.xlu1 %443 }
  0xa8   :  { %v273_v26 = vpop.permute.xlu0 %272 }
  0xa9   :  { %v449_v35 = vpop.permute.xlu1 %448 }
  0xdb   :  { %v563_v42 = vpop.f32.mrb[0].mxu0 }
  0xdc   :  { %v183_v43 = vadd.f32 %v563_v42, %v54_v40  ;;  %v177_v44 = vpop.f32.mrb[1].mxu0 }
  0xdd   :  { %v178_v45 = vadd.f32 %v177_v44, %v49_v38 }
  0xde   :  { %v217_v46 = vmax.f32 %v183_v43, 0.0 }
  0xdf   :  { %v216_v47 = vmax.f32 %v178_v45, 0.0  ;;  %v566_v48 = vpop.f32.mrb[2].mxu0 }
  0xe0   :  { %v193_v49 = vadd.f32 %v566_v48, %v64_v41  ;;  %v187_v50 = vpop.f32.mrb[3].mxu0 }
  0xe1   :  { %v605_v52 = vpack.c.bf16 %v217_v46, %v216_v47  ;;  %v188_v53 = vadd.f32 %v187_v50, %v59_v39  ;;  %v278_v47 = vpop.permute.xlu0 %277 }
  0xe2   :  { %v219_v55 = vmax.f32 %v193_v49, 0.0 }
  0xe3   :  { %v218_v56 = vmax.f32 %v188_v53, 0.0  ;;  %v569_v57 = vpop.f32.mrb[4].mxu0  ;;  %606 = vmatprep.subr.bf16.mxu0 %v605_v52  ;;  %621 = vmatprep.subr.bf16.mxu1 %v605_v52 }
  0xe4   :  { %v203_v58 = vadd.f32 %v569_v57, %v74_v51  ;;  %v197_v59 = vpop.f32.mrb[5].mxu0  ;;  %608 = vmatpush3.bf16.msra.mxu0 %v605_v52  ;;  %625 = vmatpush3.bf16.msra.mxu1 %v605_v52 }
  0xe5   :  { %v609_v60 = vpack.c.bf16 %v219_v55, %v218_v56  ;;  %v198_v61 = vadd.f32 %v197_v59, %v69_v54  ;;  %v454_v54 = vpop.permute.xlu1 %453 }
  0xe6   :  { %v221_v62 = vmax.f32 %v203_v58, 0.0 }
  0xe7   :  { %v220_v0 = vmax.f32 %v198_v61, 0.0  ;;  %v572_v1 = vpop.f32.mrb[6].mxu0  ;;  %610 = vmatprep.subr.bf16.mxu0 %v609_v60  ;;  %622 = vmatprep.subr.bf16.mxu1 %v609_v60 }
  0xe8   :  { %v213_v3 = vadd.f32 %v572_v1, %v84_v63  ;;  %v207_v4 = vpop.f32.mrb[7].mxu0  ;;  %612 = vmatpush3.bf16.msra.mxu0 %v609_v60  ;;  %626 = vmatpush3.bf16.msra.mxu1 %v609_v60 }
  0xe9   :  { %v613_v5 = vpack.c.bf16 %v221_v62, %v220_v0  ;;  %v208_v6 = vadd.f32 %v207_v4, %v79_v2  ;;  %v459_v2 = vpop.permute.xlu0 %458 }
  0xea   :  { %v223_v7 = vmax.f32 %v213_v3, 0.0 }
  0xeb   :  { %v222_v8 = vmax.f32 %v208_v6, 0.0  ;;  %614 = vmatprep.subr.bf16.mxu0 %v613_v5  ;;  %623 = vmatprep.subr.bf16.mxu1 %v613_v5  ;;  %v464_v6 = vpop.permute.xlu1 %463 }
  0xec   :  { %616 = vmatpush3.bf16.msra.mxu0 %v613_v5  ;;  %627 = vmatpush3.bf16.msra.mxu1 %v613_v5 }
  0xed   :  { %v617_v9 = vpack.c.bf16 %v223_v7, %v222_v8 }
  0xef   :  { %618 = vmatprep.subr.bf16.mxu0 %v617_v9  ;;  %624 = vmatprep.subr.bf16.mxu1 %v617_v9 }
  0xf0   :  { %620 = vmatpush3.bf16.msra.mxu0 %v617_v9  ;;  %628 = vmatpush3.bf16.msra.mxu1 %v617_v9 }
  0xf3   :  { %590 = vmatmul.mubr.msk.f32.vlgmr.msra.gmra.mrb[8].mxu0 %vm280_vm1, %v225_v10  ;;  %593 = vmatmul.mubr.msk.f32.vlgmr.msra.gmra.mrb[0].mxu1 %vm280_vm1, %v227_v11 }
  0xf4   :  { %595 = vmatprep.mubr.msk.f32.mxu1 %vm280_vm1, %v228_v12 }
  0xf7   :  { %596 = vmatmul.mubr.msk.f32.gmra.mrb[2].mxu1 %vm280_vm1, %v229_v13 }
  0xf8   :  { %598 = vmatprep.mubr.msk.f32.mxu1 %vm280_vm1, %v230_v14 }
  0xfb   :  { %599 = vmatmul.mubr.msk.f32.gmra.mrb[4].mxu1 %vm280_vm1, %v231_v15 }
 0x1c6   :  { %v591_v27 = vpop.f32.mrb[8].mxu0  ;;  %v594_v28 = vpop.f32.mrb[0].mxu1 }
 0x1c7   :  { %v377_v29 = vadd.f32 %v591_v27, %v248_v17  ;;  %v387_v30 = vadd.f32 %v594_v28, %v258_v19  ;;  %v371_v31 = vpop.f32.mrb[9].mxu0  ;;  %v381_v32 = vpop.f32.mrb[1].mxu1 }
 0x1c8   :  { %v372_v33 = vadd.f32 %v371_v31, %v243_v16  ;;  %v382_v34 = vadd.f32 %v381_v32, %v253_v18 }
 0x1c9   :  { %v411_v36 = vmax.f32 %v377_v29, 0.0  ;;  %v413_v37 = vmax.f32 %v387_v30, 0.0 }
 0x1ca   :  { %v410_v38 = vmax.f32 %v372_v33, 0.0  ;;  %v412_v39 = vmax.f32 %v382_v34, 0.0  ;;  %v597_v40 = vpop.f32.mrb[2].mxu1 }
 0x1cb   :  { %v467_v41 = vmul.f32 %v434_v21, %v411_v36  ;;  %v397_v42 = vadd.f32 %v597_v40, %v268_v24  ;;  %v391_v43 = vpop.f32.mrb[3].mxu1  ;;  %v469_v49 = vmul.f32 %v444_v25, %v413_v37 }
 0x1cc   :  { %v466_v44 = vmul.f32 %v429_v20, %v410_v38  ;;  %v468_v45 = vmul.f32 %v439_v23, %v412_v39  ;;  %v392_v46 = vadd.f32 %v391_v43, %v263_v22  ;;  %v497_v20 = vstv %s870_s6 }
 0x1cd   :  { %v476_v48 = vsel %vm474_vm2, %v467_v41, 0.0  ;;  %v415_v51 = vmax.f32 %v397_v42, 0.0  ;;  %v480_v62 = vsel %vm474_vm2, %v469_v49, 0.0 }
 0x1ce   :  { %v475_v50 = vsel %vm474_vm2, %v466_v44, 0.0  ;;  %v414_v52 = vmax.f32 %v392_v46, 0.0  ;;  %v600_v53 = vpop.f32.mrb[4].mxu1  ;;  %v478_v58 = vsel %vm474_vm2, %v468_v45, 0.0 }
 0x1cf   :  { %v477_v55 = vadd.f32 %v476_v48, %v475_v50  ;;  %v407_v56 = vadd.f32 %v600_v53, %v278_v47  ;;  %v401_v57 = vpop.f32.mrb[5].mxu1  ;;  %v471_v63 = vmul.f32 %v454_v54, %v415_v51 }
 0x1d0   :  { %v470_v59 = vmul.f32 %v449_v35, %v414_v52  ;;  %v402_v60 = vadd.f32 %v401_v57, %v273_v26 }
 0x1d1   :  { %v479_v61 = vadd.f32 %v478_v58, %v477_v55  ;;  %v417_v0 = vmax.f32 %v407_v56, 0.0  ;;  %v484_v8 = vsel %vm474_vm2, %v471_v63, 0.0 }
 0x1d2   :  { %v416_v1 = vmax.f32 %v402_v60, 0.0  ;;  %v482_v4 = vsel %vm474_vm2, %v470_v59, 0.0 }
 0x1d3   :  { %v481_v3 = vadd.f32 %v480_v62, %v479_v61  ;;  %v473_v9 = vmul.f32 %v464_v6, %v417_v0 }
 0x1d4   :  { %v472_v5 = vmul.f32 %v459_v2, %v416_v1 }
 0x1d5   :  { %v483_v7 = vadd.f32 %v482_v4, %v481_v3  ;;  %v488_v13 = vsel %vm474_vm2, %v473_v9, 0.0 }
 0x1d6   :  { %v486_v11 = vsel %vm474_vm2, %v472_v5, 0.0 }
 0x1d7   :  { %v485_v10 = vadd.f32 %v484_v8, %v483_v7 }
 0x1d9   :  { %v487_v12 = vadd.f32 %v486_v11, %v485_v10 }
 0x1db   :  { %v489_v14 = vadd.f32 %v488_v13, %v487_v12 }
 0x1dd   :  { %v490_v15 = vrot.slane %v489_v14, 4 }
 0x1df   :  { %v491_v16 = vadd.f32 %v490_v15, %v489_v14 }
 0x1e1   :  { %v492_v17 = vrot.slane %v491_v16, 2 }
 0x1e3   :  { %v493_v18 = vadd.f32 %v492_v17, %v491_v16 }
 0x1e5   :  { %v494_v19 = vrot.slane %v493_v18, 1 }
 0x1e7   :  { %v495_v21 = vadd.f32 %v494_v19, %v493_v18 }
 0x1e9   :  { %v498_v22 = vadd.f32 %v497_v20, %v495_v21 }
 0x1eb   :  { %500 = vst.msk [vmem:[#allocation3] sm:$0x1] %vm499_vm3, %v498_v22 }
 0x1ec   :  { %644 = shalt.err (!%p641_p4)
}
 0x1ed   :  { %s645_s13 = scalar_lea.hbm %s871_s7, 16 }
 0x1ee   :  { %p646_p5 = scmp.ne.s32.totalorder %s871_s7, %s645_s13  ;;  %p649_p6 = scmp.lt.u32.totalorder %s645_s13, %s871_s7 }
 0x1f0   :  { %p651_p7 = pnand %p649_p6, %p646_p5 }
 0x1f2   :  { %654 = shalt.err (!%p651_p7)
}
 0x1f3   :  { %510 = dma.vmem_to_hbm [thread:$0]  %s508_s9, 16, %s871_s7, [#allocation4]  }
 0x1f4   :  { %655 = dma.done.wait [#allocation4], 16  }
 0x1f5   :  { %656 = vsyncadd [#allocation4], 4294967280 }
 0x1f6   :  { %514 = vsyncpa [#allocation4], 1 }

</bundles_post_ra>
